<compile_context>
chip_gen: v7x
topology: tpu7x:2x2x1
jax: 0.10.0
libtpu: 0.0.40
codegen_flags: <defaults>
</compile_context>

<pallas_src>
import jax
import jax.numpy as jnp
from jax.experimental import pallas as pl
from jax.experimental.pallas import tpu as pltpu


# (tile_rows, 1) f32 block occupies ~tile_rows*512 B of VMEM (lane-padded).
# 4096 rows -> ~2 MiB per buffer, ~4 MiB double-buffered: safe within the
# scoped-VMEM defaults on v5e (16 MiB), v6e (32 MiB) and v7x (32 MiB).
_MAX_TILE_ROWS = 4096


def _splat_kernel(s_ref, out_ref):
    # s_ref:   SMEM (1,) float32 -- exp(variance * 10.0), precomputed in wrapper.
    # out_ref: VMEM (tile_rows, 1) float32 block of the final (N, 1) output.
    out_ref[...] = jnp.full(out_ref.shape, s_ref[0], dtype=out_ref.dtype)


def _choose_tiling(n: int):
    """Pick (tile_rows, grid) for an (N, 1) fill."""
    num_blocks = pl.cdiv(n, _MAX_TILE_ROWS)
    if n >= 16:
        # v7x megacore: guarantee >= 2 grid steps so both TensorCores get work.
        num_blocks = max(num_blocks, 2)
    # Round to a multiple of 8 sublanes; clamp to n (block == full dim is legal)
    # so the tail block carries as few dead rows as possible.
    tile_rows = min(((pl.cdiv(n, num_blocks) + 7) // 8) * 8, n)
    grid = (pl.cdiv(n, tile_rows),)
    return tile_rows, grid


def variance_network_forward(x: jax.Array, variance: jax.Array) -> jax.Array:
    """Pallas equivalent of VarianceNetwork.forward (modulate=False path).

    Args:
      x: (N, D) array; only N is used (mirrors `len(x)` in PyTorch).
      variance: scalar parameter (the registered nn.Parameter).

    Returns:
      (N, 1) float32 array filled with exp(variance * 10.0).
    """
    n = x.shape[0]
    if n == 0:
        return jnp.zeros((0, 1), jnp.float32)

    # Hoisted transcendental: one scalar exp in plain XLA, passed via SMEM.
    s = jnp.exp(jnp.asarray(variance, dtype=jnp.float32) * 10.0).reshape((1,))

    tile_rows, grid = _choose_tiling(n)

    out = pl.pallas_call(
        _splat_kernel,
        out_shape=jax.ShapeDtypeStruct((n, 1), jnp.float32),
        grid=grid,
        in_specs=[pl.BlockSpec(memory_space=pltpu.SMEM)],   # scalar, untiled
        out_specs=pl.BlockSpec((tile_rows, 1), lambda i: (i, 0)),
        compiler_params=pltpu.CompilerParams(
            dimension_semantics=("parallel",)),              # megacore sharding
        cost_estimate=pl.CostEstimate(
            flops=0, transcendentals=0, bytes_accessed=4 * n + 4),
    )(s)
    return out
    # TODO(synk): `modulate` clamp (inv_s.clamp_max(mod_val)) is a training-time
    # scheduling branch driven by update_step(); not part of the inference
    # forward path implemented here.


if __name__ == "__main__":
    key = jax.random.PRNGKey(0)

    # Deterministic "parameter" initialization, as the module's __init__ does:
    # variance = config.init_val  (fixed synthetic value).
    init_val = 0.3
    variance = jnp.float32(init_val)

    # Small input consistent with the module's usage: N query points of dim 3.
    n_points, point_dim = 8, 3
    x = jax.random.normal(key, (n_points, point_dim), dtype=jnp.float32)

    out = variance_network_forward(x, variance)
    out = jax.block_until_ready(out)

    ref = jnp.ones((n_points, 1), jnp.float32) * jnp.exp(variance * 10.0)
    assert out.shape == (n_points, 1), out.shape
    assert out.dtype == jnp.float32, out.dtype
    assert jnp.allclose(out, ref, rtol=1e-5, atol=1e-5), (out, ref)

    # Second check: N not a multiple of 8 / not dividing the tile size
    # (exercises the 2-step grid and the ragged final block).
    n2 = 1000
    x2 = jax.random.normal(key, (n2, point_dim), dtype=jnp.float32)
    out2 = jax.block_until_ready(variance_network_forward(x2, variance))
    ref2 = jnp.ones((n2, 1), jnp.float32) * jnp.exp(variance * 10.0)
    assert out2.shape == (n2, 1), out2.shape
    assert jnp.allclose(out2, ref2, rtol=1e-5, atol=1e-5)

    print("KERNEL_OK")
</pallas_src>

<mosaic_0001>
module attributes {stable_mosaic.version = 11 : i64} {
  func.func @_splat_kernel(%arg0: i32, %arg1: memref<1xf32, #tpu.memory_space<smem>>, %arg2: memref<8x1xf32, #tpu.memory_space<vmem>>) attributes {dimension_semantics = [#tpu.dimension_semantics<parallel>], iteration_bounds = array<i64: 1>, scalar_prefetch = 0 : i64, scratch_operands = 0 : i64, tpu.core_type = #tpu.core_type<tc>, window_params = [{transform_indices = @transform_0, window_bounds = array<i64: 1>}, {transform_indices = @transform_1, window_bounds = array<i64: 8, 1>}]} {
    %c0 = arith.constant 0 : index
    %0 = memref.load %arg1[%c0] : memref<1xf32, #tpu.memory_space<smem>>
    %1 = vector.broadcast %0 : f32 to vector<8x1xf32>
    %c0_0 = arith.constant 0 : index
    %c0_1 = arith.constant 0 : index
    %2 = vector.load %arg2[%c0_0, %c0_1] : memref<8x1xf32, #tpu.memory_space<vmem>>, vector<8x1xf32>
    tpu.vector_store %arg2[%c0_0, %c0_1], %1 {strides = array<i32>} : memref<8x1xf32, #tpu.memory_space<vmem>>, vector<8x1xf32>,
    return
  }
  func.func @transform_0(%arg0: i32) -> i32 {
    %c0_i32 = arith.constant 0 : i32
    %c0_i32_0 = arith.constant 0 : i32
    return %c0_i32 : i32
  }
  func.func @transform_1(%arg0: i32) -> (i32, i32) {
    %c0_i32 = arith.constant 0 : i32
    %c0_i32_0 = arith.constant 0 : i32
    return %arg0, %c0_i32 : i32, i32
  }
}

</mosaic_0001>

<bundles_post_ra>
// kernel: tpu_custom_call.1
= control target key start
LH: loop header
LB: loop body
LE: loop exit
PB: predicated region body
PF: predicated region fallthrough
CT: control target
= control target key end

     0   :  { %vm11_vm0 = vcmask 7168   ;;  %s33_s0 = inlined_call_operand.<no memory space> [shape: f32[1], index: 0, kind: input, shape index: {}]   ;;  %s34_s1 = inlined_call_operand.vmem [shape: f32[8,1], index: 1, kind: output, shape index: {}]  }
   0x1   :  { %v10_v0 = vstv %s33_s0 }
   0x2   :  { %12 = vst.msk [vmem:[%s34_s1] sm:$0xff] %vm11_vm0, %v10_v0 }

</bundles_post_ra>
